<compile_context>
chip_gen: v5e
topology: v5e:2x2
jax: 0.10.0
libtpu: 0.0.40
codegen_flags: <defaults>
</compile_context>

<pallas_src>
import math
import functools

import jax
import jax.numpy as jnp
from jax import lax
from jax.experimental import pallas as pl
from jax.experimental.pallas import tpu as pltpu

_MASK_VALUE = -1e6  # d2l masked_softmax convention


def _flash_attn_kernel(*refs, mask_mode, kv_valid, compute_dtype, approx_recip):
    """One grid step: online-softmax update for one (batch-block, Q-tile, K-tile).

    Ref layout depends on the (static) mask_mode:
      "none" :            (q, k, v, o, m, l, acc)
      "batch": (vl_smem,   q, k, v, o, m, l, acc)   vl_smem: (B,) int32 in SMEM
      "row"  :            (q, k, v, vl, o, m, l, acc)  vl: (bt, tq, 1) int32 VMEM block
    """
    if mask_mode == "batch":
        vl_smem, q_ref, k_ref, v_ref, o_ref, m_sc, l_sc, acc_sc = refs
        vl_row_ref = None
    elif mask_mode == "row":
        q_ref, k_ref, v_ref, vl_row_ref, o_ref, m_sc, l_sc, acc_sc = refs
        vl_smem = None
    else:
        q_ref, k_ref, v_ref, o_ref, m_sc, l_sc, acc_sc = refs
        vl_smem = vl_row_ref = None

    ki = pl.program_id(2)

    @pl.when(ki == 0)
    def _():
        m_sc[...] = jnp.full_like(m_sc, -jnp.inf)
        l_sc[...] = jnp.zeros_like(l_sc)
        acc_sc[...] = jnp.zeros_like(acc_sc)

    bt, tq, d = q_ref.shape
    tk = k_ref.shape[1]

    # Fold 1/sqrt(d) into q: tq*D VALU multiplies instead of tq*tk on the scores.
    scale = 1.0 / math.sqrt(d)
    q = (q_ref[...] * scale).astype(compute_dtype)             # (bt, tq, D)
    k = k_ref[...].astype(compute_dtype)                       # (bt, tk, D)

    # scores = (q/sqrt(d)) @ k^T : contract last axes directly, no K transpose formed.
    scores = jnp.einsum("bqd,bkd->bqk", q, k,
                        preferred_element_type=jnp.float32)    # (bt, tq, tk) f32

    # Masking (d2l masked_softmax: invalid columns -> -1e6). All branches are static.
    need_mask = mask_mode in ("batch", "row") or kv_valid is not None
    if need_mask:
        # Hoisted: built once per grid step (JAX does not CSE broadcast/iota).
        col = ki * tk + lax.broadcasted_iota(jnp.int32, (1, tq, tk), 2)

    if mask_mode == "batch":
        b0 = pl.program_id(0) * bt
        parts = [jnp.where(col[0] < vl_smem[b0 + i], scores[i], _MASK_VALUE)
                 for i in range(bt)]                           # scalar-from-SMEM compares
        scores = jnp.stack(parts, axis=0)
    elif mask_mode == "row":
        scores = jnp.where(col < vl_row_ref[...], scores, _MASK_VALUE)
    if kv_valid is not None:                                   # mask padded K columns
        scores = jnp.where(col < kv_valid, scores, _MASK_VALUE)

    # Online (flash) softmax update; statistics stay f32 on the VPU/EUP.
    m_prev = m_sc[...]
    m_new = jnp.maximum(m_prev, jnp.max(scores, axis=-1, keepdims=True))
    alpha = jnp.exp(m_prev - m_new)
    p = jnp.exp(scores - m_new)
    l_sc[...] = alpha * l_sc[...] + jnp.sum(p, axis=-1, keepdims=True)
    acc_sc[...] = alpha * acc_sc[...] + jnp.einsum(
        "bqk,bkv->bqv", p.astype(compute_dtype), v_ref[...].astype(compute_dtype),
        preferred_element_type=jnp.float32)
    m_sc[...] = m_new

    @pl.when(ki == pl.num_programs(2) - 1)
    def _():
        if approx_recip:
            inv_l = pl.reciprocal(l_sc[...], approx=True)      # EUP vrcp, ~free slot
        else:
            inv_l = 1.0 / l_sc[...]
        # dropout(p=0) is identity -> normalized accumulator is the output
        o_ref[...] = (acc_sc[...] * inv_l).astype(o_ref.dtype)


def _round_up(x, m):
    return ((x + m - 1) // m) * m


def _vmem_capacity_bytes():
    try:
        info = pltpu.get_tpu_info()
        cap = int(getattr(info, "vmem_capacity_bytes", 0))
        if cap > 0:
            return cap
    except Exception:
        pass
    return 64 * 1024 * 1024  # conservative (v7x-sized) fallback


def _choose_q_tiling(Q):
    if Q <= 256:
        return Q, Q
    for cand in (256, 128):
        if Q % cand == 0:
            return cand, Q
    return 128, _round_up(Q, 128)          # pad Q, slice padded rows off afterwards


def _choose_k_tiling(K):
    TK_MAX = 512                            # flash K tile target (review: ~512-1024)
    if K <= TK_MAX:
        return K, K
    for cand in (512, 256, 128):
        if K % cand == 0:
            return cand, K
    return 128, _round_up(K, 128)           # pad K, padded columns masked in-kernel


@functools.partial(jax.jit, static_argnames=("use_bf16_mxu", "approx_reciprocal"))
def dot_product_attention(queries, keys, values, valid_lens=None, *,
                          use_bf16_mxu=False, approx_reciprocal=True):
    """Pallas TPU scaled dot-product attention (flash/online softmax over K).

    queries: (B, Q, D), keys: (B, K, D), values: (B, K, Dv)
    valid_lens: None, (B,) or (B, Q) integer lengths
    use_bf16_mxu: feed both matmuls in bf16 with f32 accumulation (lossy, opt-in).
    approx_reciprocal: EUP approximate 1/l in the softmax normalization (~1e-3 rel).
    """
    B, Q, D = queries.shape
    _, K, _ = keys.shape
    Dv = values.shape[-1]
    out_dtype = queries.dtype

    # bf16 inputs from the caller are used directly (halves HBM->VMEM DMA bytes).
    if queries.dtype == jnp.bfloat16:
        compute_dtype = jnp.bfloat16
    else:
        compute_dtype = jnp.bfloat16 if use_bf16_mxu else queries.dtype
    # TODO(synk): for maximal DMA savings on v7x, cast Q/K/V to bf16 upstream of this
    # call instead of relying on the in-kernel cast.

    if valid_lens is None:
        mask_mode = "none"
        vl = None
    else:
        vl = jnp.asarray(valid_lens).astype(jnp.int32)
        mask_mode = "batch" if vl.ndim == 1 else "row"

    # ---- tiling + padding to sublane/lane-friendly multiples -------------------
    tq, Qp = _choose_q_tiling(Q)
    tk, Kp = _choose_k_tiling(K)
    kv_valid = K if Kp != K else None        # mask padded key columns in-kernel

    if Qp != Q:
        queries = jnp.pad(queries, ((0, 0), (0, Qp - Q), (0, 0)))
        if mask_mode == "row":
            vl = jnp.pad(vl, ((0, 0), (0, Qp - Q)))
    if Kp != K:
        keys = jnp.pad(keys, ((0, 0), (0, Kp - K), (0, 0)))
        values = jnp.pad(values, ((0, 0), (0, Kp - K), (0, 0)))

    in_it = jnp.dtype(queries.dtype).itemsize
    out_it = jnp.dtype(out_dtype).itemsize

    def block_bytes(bt):
        q_b = bt * tq * D * in_it
        k_b = bt * tk * D * in_it
        v_b = bt * tk * Dv * in_it
        o_b = bt * tq * Dv * out_it
        vl_b = bt * tq * 4 if mask_mode == "row" else 0
        scratch = bt * tq * (2 + Dv) * 4     # m, l, acc (f32)
        return 2 * (q_b + k_b + v_b + o_b + vl_b) + scratch   # double-buffered blocks

    # ---- batch packing by explicit byte budget ---------------------------------
    vmem_cap = _vmem_capacity_bytes()
    budget = int(vmem_cap * 0.75)
    bt_cap = B
    if B >= 2 and (Qp // tq) < 2:
        bt_cap = max(1, B // 2)              # keep >=2 parallel grid steps (v7x megacore)
    bt = 1
    for cand in range(bt_cap, 0, -1):
        if B % cand == 0 and block_bytes(cand) <= budget // 2:
            bt = cand
            break

    vmem_limit = int(min(vmem_cap * 0.85,
                         max(block_bytes(bt) * 1.3, 16 * 1024 * 1024)))

    grid = (B // bt, Qp // tq, Kp // tk)

    # With scalar prefetch, every index_map receives the SMEM ref as a trailing arg.
    if mask_mode == "batch":
        wrap = lambda f: (lambda bi, qi, ki, _vl: f(bi, qi, ki))
    else:
        wrap = lambda f: f

    q_spec = pl.BlockSpec((bt, tq, D), wrap(lambda bi, qi, ki: (bi, qi, 0)))
    k_spec = pl.BlockSpec((bt, tk, D), wrap(lambda bi, qi, ki: (bi, ki, 0)))
    v_spec = pl.BlockSpec((bt, tk, Dv), wrap(lambda bi, qi, ki: (bi, ki, 0)))
    o_spec = pl.BlockSpec((bt, tq, Dv), wrap(lambda bi, qi, ki: (bi, qi, 0)))
    # TODO(synk): if head_dim < 128, fold heads into the lane axis caller-side so the
    # output last dim is a 128-multiple (unmasked vst instead of vst.msk).

    in_specs = [q_spec, k_spec, v_spec]
    num_scalar_prefetch = 0
    args = (queries, keys, values)

    if mask_mode == "batch":
        num_scalar_prefetch = 1              # (B,) int32 lengths live in SMEM
        args = (vl,) + args
    elif mask_mode == "row":
        vl_row = vl.reshape(B, Qp, 1)        # (bt, tq, 1) int32 block, tiled along Q
        in_specs = in_specs + [pl.BlockSpec((bt, tq, 1),
                                            wrap(lambda bi, qi, ki: (bi, qi, 0)))]
        args = args + (vl_row,)

    kernel = functools.partial(
        _flash_attn_kernel, mask_mode=mask_mode, kv_valid=kv_valid,
        compute_dtype=compute_dtype, approx_recip=approx_reciprocal)

    grid_spec = pltpu.PrefetchScalarGridSpec(
        num_scalar_prefetch=num_scalar_prefetch,
        grid=grid,
        in_specs=in_specs,
        out_specs=o_spec,
        scratch_shapes=[pltpu.VMEM((bt, tq, 1), jnp.float32),    # m
                        pltpu.VMEM((bt, tq, 1), jnp.float32),    # l
                        pltpu.VMEM((bt, tq, Dv), jnp.float32)],  # acc
    )

    out = pl.pallas_call(
        kernel,
        out_shape=jax.ShapeDtypeStruct((B, Qp, Dv), out_dtype),
        grid_spec=grid_spec,
        compiler_params=pltpu.CompilerParams(
            dimension_semantics=("parallel", "parallel", "arbitrary"),
            vmem_limit_bytes=vmem_limit,
        ),
    )(*args)

    if Qp != Q:
        out = out[:, :Q]
    return out


def _reference(queries, keys, values, valid_lens=None):
    """Pure-JAX reference matching the PyTorch module semantics."""
    d = queries.shape[-1]
    scores = jnp.einsum("bqd,bkd->bqk", queries, keys) / math.sqrt(d)
    B, Q, K = scores.shape
    if valid_lens is not None:
        vl = jnp.asarray(valid_lens)
        if vl.ndim == 1:
            vl = jnp.broadcast_to(vl[:, None], (B, Q))
        col = jnp.arange(K)[None, None, :]
        scores = jnp.where(col < vl[:, :, None], scores, -1e6)
    w = jax.nn.softmax(scores, axis=-1)
    return jnp.einsum("bqk,bkv->bqv", w, values)


if __name__ == "__main__":
    key = jax.random.PRNGKey(0)
    kq, kk, kv, kq2, kk2, kv2 = jax.random.split(key, 6)

    # --- small shapes matching the d2l usage ---
    B, Q, K, D, Dv = 2, 8, 16, 32, 32
    queries = jax.random.normal(kq, (B, Q, D), dtype=jnp.float32)
    keys = jax.random.normal(kk, (B, K, D), dtype=jnp.float32)
    values = jax.random.normal(kv, (B, K, Dv), dtype=jnp.float32)
    valid_lens = jnp.array([3, 12], dtype=jnp.int32)

    # 1) per-batch valid_lens -> scalar-prefetched SMEM mask path
    out = jax.block_until_ready(dot_product_attention(queries, keys, values, valid_lens))
    ref = _reference(queries, keys, values, valid_lens)
    assert out.shape == (B, Q, Dv)
    assert jnp.allclose(out, ref, atol=5e-3, rtol=5e-3), "mismatch (per-batch mask)"

    # 2) no mask -> masking code compiled out entirely
    out2 = jax.block_until_ready(dot_product_attention(queries, keys, values, None))
    ref2 = _reference(queries, keys, values, None)
    assert jnp.allclose(out2, ref2, atol=5e-3, rtol=5e-3), "mismatch (no mask)"

    # 3) per-query-row valid_lens (B, Q)
    vl2d = jnp.tile(jnp.arange(1, Q + 1, dtype=jnp.int32)[None, :], (B, 1))
    out3 = jax.block_until_ready(dot_product_attention(queries, keys, values, vl2d))
    ref3 = _reference(queries, keys, values, vl2d)
    assert jnp.allclose(out3, ref3, atol=5e-3, rtol=5e-3), "mismatch (per-row mask)"

    # 4) bf16 MXU feeding with f32 accumulation (loose tolerance expected)
    out4 = jax.block_until_ready(
        dot_product_attention(queries, keys, values, valid_lens, use_bf16_mxu=True))
    assert jnp.allclose(out4, ref, atol=1e-1, rtol=1e-1), "mismatch (bf16 MXU path)"

    # --- medium shapes: exercises Q tiling, flash K tiling and K padding ---
    B2, Q2, K2, D2, Dv2 = 2, 384, 650, 64, 64
    q_m = jax.random.normal(kq2, (B2, Q2, D2), dtype=jnp.float32)
    k_m = jax.random.normal(kk2, (B2, K2, D2), dtype=jnp.float32)
    v_m = jax.random.normal(kv2, (B2, K2, Dv2), dtype=jnp.float32)

    out5 = jax.block_until_ready(dot_product_attention(q_m, k_m, v_m, None))
    ref5 = _reference(q_m, k_m, v_m, None)
    assert jnp.allclose(out5, ref5, atol=1e-2, rtol=1e-2), "mismatch (flash, no mask)"

    vl_m = jnp.array([500, 650], dtype=jnp.int32)
    out6 = jax.block_until_ready(dot_product_attention(q_m, k_m, v_m, vl_m))
    ref6 = _reference(q_m, k_m, v_m, vl_m)
    assert jnp.allclose(out6, ref6, atol=1e-2, rtol=1e-2), "mismatch (flash, per-batch mask)"

    print("KERNEL_OK")
</pallas_src>

<mosaic_0001>
module attributes {stable_mosaic.version = 11 : i64} {
  func.func @_flash_attn_kernel(%arg0: i32, %arg1: i32, %arg2: i32, %arg3: memref<2xi32, #tpu.memory_space<smem>>, %arg4: memref<1x8x32xf32, #tpu.memory_space<vmem>>, %arg5: memref<1x16x32xf32, #tpu.memory_space<vmem>>, %arg6: memref<1x16x32xf32, #tpu.memory_space<vmem>>, %arg7: memref<1x8x32xf32, #tpu.memory_space<vmem>>, %arg8: memref<1x8x1xf32, #tpu.memory_space<vmem>>, %arg9: memref<1x8x1xf32, #tpu.memory_space<vmem>>, %arg10: memref<1x8x32xf32, #tpu.memory_space<vmem>>) attributes {dimension_semantics = [#tpu.dimension_semantics<parallel>, #tpu.dimension_semantics<parallel>, #tpu.dimension_semantics<arbitrary>], iteration_bounds = array<i64: 2, 1, 1>, scalar_prefetch = 1 : i64, scratch_operands = 3 : i64, tpu.core_type = #tpu.core_type<tc>, window_params = [{transform_indices = @transform_0, window_bounds = array<i64: 1, 8, 32>}, {transform_indices = @transform_1, window_bounds = array<i64: 1, 16, 32>}, {transform_indices = @transform_2, window_bounds = array<i64: 1, 16, 32>}, {transform_indices = @transform_3, window_bounds = array<i64: 1, 8, 32>}]} {
    %c0_i32 = arith.constant 0 : i32
    %0 = arith.cmpi eq, %arg2, %c0_i32 : i32
    %1 = arith.extui %0 : i1 to i32
    %c0_i32_0 = arith.constant 0 : i32
    %2 = arith.cmpi ne, %1, %c0_i32_0 : i32
    scf.if %2 {
      %cst_35 = arith.constant 0xFF800000 : f32
      %49 = vector.broadcast %cst_35 : f32 to vector<1x8x1xf32>
      %c0_36 = arith.constant 0 : index
      %c0_37 = arith.constant 0 : index
      %c0_38 = arith.constant 0 : index
      %50 = vector.load %arg8[%c0_36, %c0_37, %c0_38] : memref<1x8x1xf32, #tpu.memory_space<vmem>>, vector<1x8x1xf32>
      tpu.vector_store %arg8[%c0_36, %c0_37, %c0_38], %49 {strides = array<i32>} : memref<1x8x1xf32, #tpu.memory_space<vmem>>, vector<1x8x1xf32>,
      %cst_39 = arith.constant 0.000000e+00 : f32
      %51 = vector.broadcast %cst_39 : f32 to vector<1x8x1xf32>
      %c0_40 = arith.constant 0 : index
      %c0_41 = arith.constant 0 : index
      %c0_42 = arith.constant 0 : index
      %52 = vector.load %arg9[%c0_40, %c0_41, %c0_42] : memref<1x8x1xf32, #tpu.memory_space<vmem>>, vector<1x8x1xf32>
      tpu.vector_store %arg9[%c0_40, %c0_41, %c0_42], %51 {strides = array<i32>} : memref<1x8x1xf32, #tpu.memory_space<vmem>>, vector<1x8x1xf32>,
      %cst_43 = arith.constant 0.000000e+00 : f32
      %53 = vector.broadcast %cst_43 : f32 to vector<1x8x32xf32>
      %c0_44 = arith.constant 0 : index
      %c0_45 = arith.constant 0 : index
      %c0_46 = arith.constant 0 : index
      %54 = vector.load %arg10[%c0_44, %c0_45, %c0_46] : memref<1x8x32xf32, #tpu.memory_space<vmem>>, vector<1x8x32xf32>
      tpu.vector_store %arg10[%c0_44, %c0_45, %c0_46], %53 {strides = array<i32>} : memref<1x8x32xf32, #tpu.memory_space<vmem>>, vector<1x8x32xf32>,
    } else {
    }
    %c0 = arith.constant 0 : index
    %c0_1 = arith.constant 0 : index
    %c0_2 = arith.constant 0 : index
    %3 = vector.load %arg4[%c0, %c0_1, %c0_2] : memref<1x8x32xf32, #tpu.memory_space<vmem>>, vector<1x8x32xf32>
    %cst = arith.constant 0.176776692 : f32
    %4 = vector.broadcast %cst : f32 to vector<1x8x32xf32>
    %5 = arith.mulf %3, %4 : vector<1x8x32xf32>
    %c0_3 = arith.constant 0 : index
    %c0_4 = arith.constant 0 : index
    %c0_5 = arith.constant 0 : index
    %6 = vector.load %arg5[%c0_3, %c0_4, %c0_5] : memref<1x16x32xf32, #tpu.memory_space<vmem>>, vector<1x16x32xf32>
    "tpu.trace_start"() <{level = 10 : i32, message = "bqd,bkd->bqk"}> : () -> ()
    %cst_6 = arith.constant dense<0.000000e+00> : vector<1x8x16xf32>
    %7 = tpu.matmul %5, %6, %cst_6 {dimension_numbers = #tpu.dot_dimension_numbers<[2], [2], [1], [1], [0, 0, 0, 1, 1, 1], [0], [0]>} : vector<1x8x32xf32>, vector<1x16x32xf32>, vector<1x8x16xf32> -> vector<1x8x16xf32>
    "tpu.trace_stop"() : () -> ()
    %c16_i32 = arith.constant 16 : i32
    %8 = arith.muli %arg2, %c16_i32 : i32
    %9 = tpu.iota {dimensions = array<i32: 2>} : vector<1x8x16xi32>
    %10 = vector.broadcast %8 : i32 to vector<1x8x16xi32>
    %11 = arith.addi %10, %9 : vector<1x8x16xi32>
    %c1_i32 = arith.constant 1 : i32
    %12 = arith.muli %arg0, %c1_i32 : i32
    %13 = vector.shape_cast %11 : vector<1x8x16xi32> to vector<8x16xi32>
    %c0_i32_7 = arith.constant 0 : i32
    %14 = arith.addi %12, %c0_i32_7 : i32
    %15 = arith.index_cast %14 : i32 to index
    %16 = memref.load %arg3[%15] : memref<2xi32, #tpu.memory_space<smem>>
    %17 = vector.broadcast %16 : i32 to vector<8x16xi32>
    %18 = arith.cmpi slt, %13, %17 : vector<8x16xi32>
    %19 = vector.shape_cast %7 : vector<1x8x16xf32> to vector<8x16xf32>
    %cst_8 = arith.constant -1.000000e+06 : f32
    %20 = vector.broadcast %cst_8 : f32 to vector<8x16xf32>
    %21 = arith.select %18, %19, %20 : vector<8x16xi1>, vector<8x16xf32>
    %22 = vector.shape_cast %21 : vector<8x16xf32> to vector<1x8x16xf32>
    %c0_9 = arith.constant 0 : index
    %c0_10 = arith.constant 0 : index
    %c0_11 = arith.constant 0 : index
    %23 = vector.load %arg8[%c0_9, %c0_10, %c0_11] : memref<1x8x1xf32, #tpu.memory_space<vmem>>, vector<1x8x1xf32>
    %cst_12 = arith.constant dense<0xFF800000> : vector<1x8xf32>
    %24 = vector.multi_reduction <maximumf>, %22, %cst_12 [2] : vector<1x8x16xf32> to vector<1x8xf32>
    %25 = vector.shape_cast %24 : vector<1x8xf32> to vector<1x8x1xf32>
    %26 = arith.maximumf %23, %25 : vector<1x8x1xf32>
    %27 = arith.subf %23, %26 : vector<1x8x1xf32>
    %28 = math.exp %27 : vector<1x8x1xf32>
    %29 = vector.broadcast %26 : vector<1x8x1xf32> to vector<1x8x16xf32>
    %30 = arith.subf %22, %29 : vector<1x8x16xf32>
    %31 = math.exp %30 : vector<1x8x16xf32>
    %c0_13 = arith.constant 0 : index
    %c0_14 = arith.constant 0 : index
    %c0_15 = arith.constant 0 : index
    %32 = vector.load %arg9[%c0_13, %c0_14, %c0_15] : memref<1x8x1xf32, #tpu.memory_space<vmem>>, vector<1x8x1xf32>
    %33 = arith.mulf %28, %32 : vector<1x8x1xf32>
    %cst_16 = arith.constant dense<0.000000e+00> : vector<1x8xf32>
    %34 = vector.multi_reduction <add>, %31, %cst_16 [2] : vector<1x8x16xf32> to vector<1x8xf32>
    %35 = vector.shape_cast %34 : vector<1x8xf32> to vector<1x8x1xf32>
    %36 = arith.addf %33, %35 : vector<1x8x1xf32>
    %c0_17 = arith.constant 0 : index
    %c0_18 = arith.constant 0 : index
    %c0_19 = arith.constant 0 : index
    %37 = vector.load %arg9[%c0_17, %c0_18, %c0_19] : memref<1x8x1xf32, #tpu.memory_space<vmem>>, vector<1x8x1xf32>
    tpu.vector_store %arg9[%c0_17, %c0_18, %c0_19], %36 {strides = array<i32>} : memref<1x8x1xf32, #tpu.memory_space<vmem>>, vector<1x8x1xf32>,
    %c0_20 = arith.constant 0 : index
    %c0_21 = arith.constant 0 : index
    %c0_22 = arith.constant 0 : index
    %38 = vector.load %arg10[%c0_20, %c0_21, %c0_22] : memref<1x8x32xf32, #tpu.memory_space<vmem>>, vector<1x8x32xf32>
    %39 = vector.broadcast %28 : vector<1x8x1xf32> to vector<1x8x32xf32>
    %40 = arith.mulf %39, %38 : vector<1x8x32xf32>
    %c0_23 = arith.constant 0 : index
    %c0_24 = arith.constant 0 : index
    %c0_25 = arith.constant 0 : index
    %41 = vector.load %arg6[%c0_23, %c0_24, %c0_25] : memref<1x16x32xf32, #tpu.memory_space<vmem>>, vector<1x16x32xf32>
    "tpu.trace_start"() <{level = 10 : i32, message = "bqk,bkv->bqv"}> : () -> ()
    %cst_26 = arith.constant dense<0.000000e+00> : vector<1x8x32xf32>
    %42 = tpu.matmul %31, %41, %cst_26 {dimension_numbers = #tpu.dot_dimension_numbers<[2], [1], [1], [2], [0, 0, 0, 1, 1, 2], [0], [0]>} : vector<1x8x16xf32>, vector<1x16x32xf32>, vector<1x8x32xf32> -> vector<1x8x32xf32>
    "tpu.trace_stop"() : () -> ()
    %43 = arith.addf %40, %42 : vector<1x8x32xf32>
    %c0_27 = arith.constant 0 : index
    %c0_28 = arith.constant 0 : index
    %c0_29 = arith.constant 0 : index
    %44 = vector.load %arg10[%c0_27, %c0_28, %c0_29] : memref<1x8x32xf32, #tpu.memory_space<vmem>>, vector<1x8x32xf32>
    tpu.vector_store %arg10[%c0_27, %c0_28, %c0_29], %43 {strides = array<i32>} : memref<1x8x32xf32, #tpu.memory_space<vmem>>, vector<1x8x32xf32>,
    %c0_30 = arith.constant 0 : index
    %c0_31 = arith.constant 0 : index
    %c0_32 = arith.constant 0 : index
    %45 = vector.load %arg8[%c0_30, %c0_31, %c0_32] : memref<1x8x1xf32, #tpu.memory_space<vmem>>, vector<1x8x1xf32>
    tpu.vector_store %arg8[%c0_30, %c0_31, %c0_32], %26 {strides = array<i32>} : memref<1x8x1xf32, #tpu.memory_space<vmem>>, vector<1x8x1xf32>,
    %c0_i32_33 = arith.constant 0 : i32
    %46 = arith.cmpi eq, %arg2, %c0_i32_33 : i32
    %47 = arith.extui %46 : i1 to i32
    %c0_i32_34 = arith.constant 0 : i32
    %48 = arith.cmpi ne, %47, %c0_i32_34 : i32
    scf.if %48 {
      %c0_35 = arith.constant 0 : index
      %c0_36 = arith.constant 0 : index
      %c0_37 = arith.constant 0 : index
      %49 = vector.load %arg9[%c0_35, %c0_36, %c0_37] : memref<1x8x1xf32, #tpu.memory_space<vmem>>, vector<1x8x1xf32>
      %50 = tpu.reciprocal %49 {approx = true} : vector<1x8x1xf32> -> vector<1x8x1xf32>
      %c0_38 = arith.constant 0 : index
      %c0_39 = arith.constant 0 : index
      %c0_40 = arith.constant 0 : index
      %51 = vector.load %arg10[%c0_38, %c0_39, %c0_40] : memref<1x8x32xf32, #tpu.memory_space<vmem>>, vector<1x8x32xf32>
      %52 = vector.broadcast %50 : vector<1x8x1xf32> to vector<1x8x32xf32>
      %53 = arith.mulf %51, %52 : vector<1x8x32xf32>
      %c0_41 = arith.constant 0 : index
      %c0_42 = arith.constant 0 : index
      %c0_43 = arith.constant 0 : index
      %54 = vector.load %arg7[%c0_41, %c0_42, %c0_43] : memref<1x8x32xf32, #tpu.memory_space<vmem>>, vector<1x8x32xf32>
      tpu.vector_store %arg7[%c0_41, %c0_42, %c0_43], %53 {strides = array<i32>} : memref<1x8x32xf32, #tpu.memory_space<vmem>>, vector<1x8x32xf32>,
    } else {
    }
    return
  }
  func.func @transform_0(%arg0: i32, %arg1: i32, %arg2: i32, %arg3: memref<2xi32, #tpu.memory_space<smem>>) -> (i32, i32, i32) {
    %c0_i32 = arith.constant 0 : i32
    %c0_i32_0 = arith.constant 0 : i32
    return %arg0, %arg1, %c0_i32 : i32, i32, i32
  }
  func.func @transform_1(%arg0: i32, %arg1: i32, %arg2: i32, %arg3: memref<2xi32, #tpu.memory_space<smem>>) -> (i32, i32, i32) {
    %c0_i32 = arith.constant 0 : i32
    %c0_i32_0 = arith.constant 0 : i32
    return %arg0, %arg2, %c0_i32 : i32, i32, i32
  }
  func.func @transform_2(%arg0: i32, %arg1: i32, %arg2: i32, %arg3: memref<2xi32, #tpu.memory_space<smem>>) -> (i32, i32, i32) {
    %c0_i32 = arith.constant 0 : i32
    %c0_i32_0 = arith.constant 0 : i32
    return %arg0, %arg2, %c0_i32 : i32, i32, i32
  }
  func.func @transform_3(%arg0: i32, %arg1: i32, %arg2: i32, %arg3: memref<2xi32, #tpu.memory_space<smem>>) -> (i32, i32, i32) {
    %c0_i32 = arith.constant 0 : i32
    %c0_i32_0 = arith.constant 0 : i32
    return %arg0, %arg1, %c0_i32 : i32, i32, i32
  }
}

</mosaic_0001>

<bundles_post_ra>
// kernel: dot_product_attention.1
= control target key start
LH: loop header
LB: loop body
LE: loop exit
PB: predicated region body
PF: predicated region fallthrough
CT: control target
= control target key end

     0   :  { %s892_s18 = smov [#allocation6]   ;;  %s1101_s0 = inlined_call_operand.vmem [shape: s32[2], index: 0, kind: input, shape index: {}]   ;;  %s1102_s1 = inlined_call_operand.hbm [shape: f32[2,8,32], index: 1, kind: input, shape index: {}]   ;;  %s1103_s2 = inlined_call_operand.hbm [shape: f32[2,16,32], index: 2, kind: input, shape index: {}]   ;;  %s1104_s3 = inlined_call_operand.hbm [shape: f32[2,16,32], index: 3, kind: input, shape index: {}]   ;;  %s1105_s4 = inlined_call_operand.hbm [shape: f32[2,8,32], index: 4, kind: output, shape index: {}]  }
   0x1   :  { %1108 = sst [smem:[#allocation21_spill]] %s1103_s2  ;;  %s10_s17 = sshll.u32 %s1101_s0, 4  ;;  %s11_s17 = int_to_ptr.vmem [resolvable:$true] %s10_s17 }
   0x2   :  { %13 = dma.vmem_to_smem %s11_s17, 16, %s892_s18, [#allocation5] }
   0x3   :  { %854 = dma.done.wait [#allocation5], 16 }
   0x4   :  { %855 = vsyncadd [#allocation5], 4294967280 }
   0x5   :  { %16 = sfence }
   0x6   :  { %17 = vsyncpa [#allocation8], 0 }
   0x7   :  { %19 = vsyncpa [#allocation8 + $0x1], 0 }
   0x8   :  { %20 = vsyncpa [#allocation11], 0 }
   0x9   :  { %22 = vsyncpa [#allocation11 + $0x1], 0 }
   0xa   :  { %23 = vsyncpa [#allocation9], 0 }
   0xb   :  { %25 = vsyncpa [#allocation9 + $0x1], 0  ;;  %s926_s19 = smov 0   ;;  %s928_s20 = smov 0  }
   0xc   :  { %s930_s21 = smov 0   ;;  %s932_s22 = smov 0  }
   0xd   :  { %s934_s0 = smov 0   ;;  %s936_s23 = smov 0  }
   0xe LB: > { %1109 = sst [smem:[#allocation18_spill]] %s878_s21  ;;  %s957_s24 = sadd.s32 4294967295, %s890_s23   ;;  %s890_s23 = sphi %s936_s23, %s31_s23   ;;  %s886_s0 = sphi %s934_s0, %s1124_s0   ;;  %s882_s22 = sphi %s932_s22, %s1123_s22   ;;  %s878_s21 = sphi %s930_s21, %s1119_s21   ;;  %s874_s20 = sphi %s928_s20, %s1122_s20   ;;  %s870_s19 = sphi %s926_s19, %s1121_s19  }
   0xf   : > { %s587_s25 = sadd.s32 4294967294, %s890_s23   ;;  %s50_s26 = sadd.s32 1, %s886_s0 }
  0x10   : > { %s59_s27 = sadd.s32 1, %s878_s21  ;;  %p52_p0 = scmp.ge.s32.totalorder %s50_s26, 2 }
  0x11   : > { %p66_p1 = scmp.ne.s32.totalorder %s878_s21, %s874_s20  ;;  %p67_p2 = scmp.eq.s32.totalorder %s890_s23, 0 }
  0x12   : > { %p72_p3 = scmp.ne.s32.totalorder %s874_s20, %s870_s19  ;;  %s1126_s26 = smov (%p52_p0, %s50_s26), 0 }
  0x13   : > { %1110 = sst [smem:[#allocation19_spill]] %s1126_s26  ;;  %p969_p4 = por %p67_p2, %p66_p1 }
  0x14   : > { %p73_p5 = scmp.eq.s32.totalorder %s957_s24, 0  ;;  %s54_s29 = ssub.s32 %s886_s0, %s1126_s26 }
  0x15   : > { %p154_p6 = scmp.eq.s32.totalorder %s957_s24, 1  ;;  %p57_p7 = scmp.eq.s32.totalorder %s54_s29, 0 }
  0x16   : > { %p977_p8 = por %p73_p5, %p72_p3  ;;  %p160_p10 = scmp.eq.s32.totalorder %s587_s25, 1 }
  0x17   : > { %p981_p9 = por %p154_p6, %p66_p1  ;;  %p589_p12 = scmp.ge.s32.totalorder %s890_s23, 2 }
  0x18   : > { %s986_s6 = scalar_select %p57_p7, %s878_s21, %s59_s27  }
  0x19   : > { %p988_p11 = por %p160_p10, %p72_p3  ;;  %p635_p13 = scmp.lt.s32.totalorder %s890_s23, 2 }
  0x1a   : > { %1114 = sst [smem:[#allocation20_spill]] %s986_s6  ;;  %s995_s8 = sand.u32 1, %s878_s21  }
  0x1b   : > { %s200_s9 = sand.u32 1, %s890_s23   ;;  %s592_s10 = sshll.u32 %s995_s8, 4 }
  0x1c   : > { %p1001_p0 = pnand %p635_p13, %p969_p4  ;;  %s611_s12 = sshll.u32 %s886_s0, 4 }
  0x1d   : > { %s1117_s2 = sld [smem:[#allocation21_spill]]  ;;  %s204_s17 = scalar_lea.vmem [#allocation10], %s592_s10 }
  0x1e   : > { %s214_s18 = sshll.u32 %s204_s17, 4  ;;  %s201_s25 = scalar_lea.sflag [#allocation11], %s200_s9  ;;  %s215_s18 = int_to_ptr.vmem [resolvable:$true] %s214_s18 }
  0x1f   : > { %s893_s27 = smov 128   ;;  %s894_s28 = smov 8  }
  0x20   : > { %s235_s6 = scalar_lea.hbm %s1104_s3, %s611_s12  ;;  %s228_s14 = scalar_lea.vmem [#allocation12], %s592_s10 }
  0x21   : > { %s236_s13 = sshll.u32 %s235_s6, 4  ;;  %p598_p1 = scmp.ge.s32.totalorder %s890_s23, 1  ;;  %s237_s13 = int_to_ptr.hbm [resolvable:$true] %s236_s13 }
  0x22   : > { %p246_p2 = scmp.lt.s32.totalorder %s890_s23, 3  ;;  %s590_s9 = sshll.u32 %s995_s8, 3 }
  0x23   : > { %s211_s15 = scalar_lea.hbm %s1117_s2, %s611_s12  ;;  %s591_s17 = sshll.u32 %s886_s0, 3 }
  0x24   : > { %s212_s16 = sshll.u32 %s211_s15, 4  ;;  %s238_s15 = sshll.u32 %s228_s14, 4  ;;  %s213_s16 = int_to_ptr.hbm [resolvable:$true] %s212_s16  ;;  %s239_s15 = int_to_ptr.vmem [resolvable:$true] %s238_s15 }
  0x25   : > { %627 = dma.hbm_to_vmem [thread:$0]  (!%p1001_p0), %s213_s16, 256, %s215_s18, %s201_s25, %s893_s27, %s893_s27, %s894_s28  }
  0x26   : > { %p247_p3 = pnand %p598_p1, %p246_p2  ;;  %s189_s16 = scalar_lea.hbm %s1102_s1, %s591_s17 }
  0x27   : > { %s191_s18 = sshll.u32 %s189_s16, 4  ;;  %s184_s26 = scalar_lea.vmem [#allocation7], %s590_s9  ;;  %s192_s18 = int_to_ptr.hbm [resolvable:$true] %s191_s18 }
  0x28   : > { %s193_s12 = sshll.u32 %s184_s26, 4  ;;  %s181_s6 = scalar_lea.sflag [#allocation8], %s995_s8  ;;  %s194_s12 = int_to_ptr.vmem [resolvable:$true] %s193_s12 }
  0x29   : > { %624 = dma.hbm_to_vmem [thread:$0]  (!%p1001_p0), %s192_s18, 128, %s194_s12, %s181_s6  }
  0x2a   : > { %630 = dma.hbm_to_vmem [thread:$0]  (!%p1001_p0), %s237_s13, 256, %s239_s15, %s201_s25, %s893_s27, %s893_s27, %s894_s28  }
  0x2b   : > { %250 = sbr.rel (%p247_p3) target bundleno = 662 (0x296), region = 32  ;;  %s1027_s10 = sand.u32 (!%p247_p3), 1, %s874_s20  }
  0x2c   : > { %s599_s2 = sshll.u32 (!%p247_p3), %s1027_s10, 3  ;;  %s253_s21 = scalar_lea.sflag (!%p247_p3), [#allocation8], %s1027_s10 }
  0x2d   : > { %s256_s29 = scalar_lea.vmem (!%p247_p3), [#allocation7], %s599_s2 }
  0x30   : > { %857 = dma.done.wait (%p977_p8), %s253_s21, 128  }
  0x31   : > { %859 = vsyncadd (%p977_p8), %s253_s21, 4294967168  ;;  %s262_s8 = sand.u32 1, %s957_s24   ;;  %s600_s11 = sshll.u32 %s1027_s10, 4 }
  0x32   : > { %s263_s25 = scalar_lea.sflag [#allocation11], %s262_s8  ;;  %s266_s27 = scalar_lea.vmem [#allocation10], %s600_s11 }
  0x33   : > { %861 = dma.done.wait (%p977_p8), %s263_s25, 512  }
  0x34   : > { %863 = vsyncadd (%p977_p8), %s263_s25, 4294966784  ;;  %vm319_vm0 = vcmask 261120   ;;  %v324_v0 = vld [vmem:[%s266_s27 + $0x8] sm:$0xff]  ;;  %v323_v2 = vld [vmem:[%s266_s27] sm:$0xff]  ;;  %vm316_vm1 = vcmask 7168   ;;  %v895_v4 = vmov -inf   ;;  %v356_v5 = vlaneseq }
  0x35   : > { %603 = vmatpush.xpose.msk.msra.mxu0 %vm319_vm0, %v324_v0  ;;  %v321_v1 = vld [vmem:[%s256_s29] sm:$0xff]  ;;  %317 = vst.msk [vmem:[#allocation2] sm:$0xff] %vm316_vm1, %v895_v4  ;;  %s360_s24 = sld [smem:[#allocation6 + %s882_s22]]  ;;  %vm365_vm3 = vcmask 130048   ;;  %v896_v11 = vmov 0   ;;  %v897_v12 = vmov 0.0  }
  0x36   : > { %v322_v3 = vmul.f32 0.17677669, %v321_v1  ;;  %v357_v6 = vand.u32 127, %v356_v5  ;;  %691 = vset.pattern.permute.xlu0 %v896_v11  ;;  %692 = vset.pattern.permute.xlu1 %v896_v11  ;;  %318 = vst.msk [vmem:[#allocation3] sm:$0xff] %vm316_vm1, %v897_v12  ;;  %s276_s30 = scalar_lea.vmem [#allocation12], %s600_s11  ;;  %s608_s28 = sshll.u32 %s882_s22, 3 }
  0x37   : > { %693 = vset.pattern.permute.xlu2 %v896_v11  ;;  %320 = vst.msk [vmem:[#allocation4] sm:$0xff] %vm319_vm0, %v897_v12  ;;  %v397_v17 = vld [vmem:[%s276_s30 + $0x8] sm:$0xff]  ;;  %v396_v18 = vld [vmem:[%s276_s30] sm:$0xff]  ;;  %s449_s15 = scalar_lea.hbm %s1105_s4, %s608_s28  ;;  %s309_s9 = scalar_lea.vmem [#allocation13], %s599_s2 }
  0x38   : > { %415 = vmatpush.msra.mxu1 %v397_v17  ;;  %s451_s17 = sshll.u32 %s309_s9, 4  ;;  %s453_s16 = sshll.u32 %s449_s15, 4  ;;  %s452_s17 = int_to_ptr.vmem [resolvable:$true] %s451_s17  ;;  %s454_s16 = int_to_ptr.hbm [resolvable:$true] %s453_s16 }
  0x39   : > { %604 = vmatpush.xpose.msk.msra.mxu0 %vm319_vm0, %v323_v2  ;;  %s438_s18 = scalar_lea.sflag [#allocation9], %s1027_s10  ;;  %s816_s26 = sshra.s32 %s454_s16, 4  ;;  %s817_s26 = int_to_ptr.hbm [resolvable:$true] %s816_s26 }
  0x3a   : > { %416 = vmatpush.msra.mxu1 %v396_v18  ;;  %s818_s22 = scalar_lea.hbm %s817_s26, 8  ;;  %s822_s2 = scalar_lea.hbm %s1105_s4, 16 }
  0x3b   : > { %v361_v7 = vstv %s360_s24  ;;  %p819_p4 = scmp.ne.s32.totalorder %s817_s26, %s818_s22  ;;  %p823_p7 = scmp.lt.s32.totalorder %s817_s26, %s1105_s4 }
  0x3c   : > { %605 = vmatmul.msk.f32.vlgmr.msra.gmra.mxu0 %vm319_vm0, %v322_v3  ;;  %vm362_vm2 = vcmp.lt.s32.totalorder %v357_v6, %v361_v7  ;;  %v364_v13 = vld [vmem:[#allocation2] sm:$0xff]  ;;  %p824_p8 = scmp.lt.s32.totalorder %s822_s2, %s818_s22 }
  0x3d   : > { %v381_v26 = vld [vmem:[#allocation3] sm:$0xff]  ;;  %p820_p5 = pnand %p819_p4, %p981_p9 }
  0x3e   : > { %v389_v32 = vld [vmem:[#allocation4] sm:$0xff]  ;;  %p825_p10 = por %p824_p8, %p823_p7 }
  0x3f   : > { %p821_p6 = pneg %p820_p5 }
  0x41   : > { %p826_p13 = pnand %p825_p10, %p821_p6 }
  0xb9   : > { %v352_v8 = vpop.f32.mrf.mxu0 }
  0xba   : > { %v363_v9 = vsel %vm362_vm2, %v352_v8, -1000000.0 }
  0xbb   : > { %v366_v10 = vsel %vm365_vm3, %v363_v9, -inf }
  0xbc   : > { %367 = vmax.xlane.f32.xlu0 %v366_v10 }
 0x12f   : > { %v368_v14 = vpop.xlane.xlu0 %367 }
 0x130   : > { %v369_v15 = vmax.f32 %v364_v13, %v368_v14 }
 0x132   : > { %v370_v16 = vsub.f32 %v364_v13, %v369_v15  ;;  %423 = vst.msk [vmem:[#allocation2] sm:$0xff] %vm316_vm1, %v369_v15  ;;  %375 = vperm.xlu0 %691, %v369_v15  }
 0x134   : > { %v371_v24 = vmul.f32 1.442695, %v370_v16 }
 0x1a4   : > { %v376_v19 = vpop.permute.xlu0 %375 }
 0x1a5   : > { %v378_v20 = vsub.f32 %v363_v9, %v376_v19 }
 0x1a7   : > { %v379_v21 = vmul.f32 1.442695, %v378_v20 }
 0x1a9   : > { %694 = vpow2.f32 %v379_v21 }
 0x1aa   : > { %696 = vpow2.f32 %v371_v24 }
 0x1af   : > { %v695_v22 = vpop.eup %694 }
 0x1b0   : > { %606 = vmatmul.msk.f32.vlgmr.msra.gmra.mxu1 %vm365_vm3, %v695_v22  ;;  %v383_v23 = vsel %vm365_vm3, %v695_v22, 0.0  ;;  %v697_v25 = vpop.eup %696 }
 0x1b1   : > { %384 = vadd.xlane.f32.xlu1 %v383_v23  ;;  %v382_v27 = vmul.f32 %v697_v25, %v381_v26 }
 0x1ca   : > { %392 = vperm.xlu1 %692, %v697_v25  }
 0x224   : > { %v385_v28 = vpop.xlane.xlu1 %384 }
 0x225   : > { %v386_v29 = vadd.f32 %v385_v28, %v382_v27 }
 0x227   : > { %388 = vst.msk [vmem:[#allocation3] sm:$0xff] %vm316_vm1, %v386_v29 }
 0x22d   : > { %v418_v35 = vpop.f32.mrf.mxu1 }
 0x22e   : > { %v427_v30 = vld [vmem:[#allocation3] sm:$0xff] }
 0x22f   : > { %698 = vrcp.f32 %v427_v30 }
 0x235   : > { %v699_v31 = vpop.eup %698 }
 0x236   : > { %432 = vperm.xlu2 %693, %v699_v31  }
 0x23c   : > { %v393_v33 = vpop.permute.xlu1 %392 }
 0x23d   : > { %v395_v34 = vmul.f32 %v393_v33, %v389_v32 }
 0x23f   : > { %v421_v36 = vadd.f32 %v418_v35, %v395_v34 }
 0x241   : > { %422 = vst.msk [vmem:[#allocation4] sm:$0xff] %vm319_vm0, %v421_v36 }
 0x248   : > { %v429_v37 = vld [vmem:[#allocation4] sm:$0xff] }
 0x290   : > { %v433_v38 = vpop.permute.xlu2 %432 }
 0x291   : > { %v435_v39 = vmul.f32 %v433_v38, %v429_v37 }
 0x293   : > { %436 = vst.msk [vmem:[%s309_s9] sm:$0xff] %vm319_vm0, %v435_v39 }
 0x294   : > { %829 = shalt.err (!%p826_p13)
}
 0x295   : > { %619 = dma.vmem_to_hbm [thread:$0]  (%p981_p9), %s452_s17, 128, %s454_s16, %s438_s18  }
 0x296 PF: > { %s465_s10 = sand.u32 1, %s870_s19   ;;  %p632_p0 = pnand %p589_p12, %p988_p11 }
 0x297   : > { %s466_s8 = scalar_lea.sflag [#allocation9], %s465_s10 }
 0x298   : > { %p633_p1 = pneg %p632_p0 }
 0x29a   : > { %865 = dma.done.wait (%p633_p1), %s466_s8, 128  }
 0x29b   : > { %867 = vsyncadd (%p633_p1), %s466_s8, 4294967168  ;;  %s31_s23 = sadd.s32 1, %s890_s23   ;;  %s1118_s11 = sld [smem:[#allocation18_spill]] }
 0x29c   : > { %p28_p2 = scmp.ge.s32.totalorder %s31_s23, 4   ;;  %s1119_s21 = sld [smem:[#allocation20_spill]] }
 0x29d   : > { %s1120_s5 = sld [smem:[#allocation19_spill]]  ;;  %s1121_s19 = smov %s874_s20 }
 0x29e   : > { %s1123_s22 = smov %s886_s0 }
 0x29f   :  { %30 = sbr.rel (!%p28_p2) target bundleno = 14 (0xe), region = 109 }
 0x2a1   : > { %s1122_s20 = smov %s1118_s11 }
 0x2a3   : > { %s1124_s0 = smov %s1120_s5 }
 0x2a4   :  { %472 = vsyncpa [#allocation8], 1 }
 0x2a5   :  { %474 = vsyncpa [#allocation8 + $0x1], 1 }
 0x2a6   :  { %475 = vsyncpa [#allocation11], 1 }
 0x2a7   :  { %477 = vsyncpa [#allocation11 + $0x1], 1 }
 0x2a8   :  { %478 = vsyncpa [#allocation9], 1 }
 0x2a9   :  { %480 = vsyncpa [#allocation9 + $0x1], 1 }

</bundles_post_ra>
